<compile_context>
chip_gen: v7x
topology: tpu7x:2x2x1
jax: 0.10.0
libtpu: 0.0.40
codegen_flags: <defaults>
</compile_context>

<pallas_src>
import jax
import jax.numpy as jnp
from jax.experimental import pallas as pl
from jax.experimental.pallas import tpu as pltpu

BN_EPS = 1e-5


# --------------------------- fused kernel ------------------------------------

def _fused_mlp_kernel(x_ref, w1_ref, gb_ref, w2_ref, o_ref, h_ref):
    """layer1 (once, at grid step 0) + one out-feature tile of layer3 (every step).

    layer1: Linear(bias-free) -> BatchNorm1d(affine, batch stats) -> ReLU
    layer3: Linear(bias-free) -> BatchNorm1d(affine=False, batch stats)
    h_ref is a VMEM scratch holding the full (N, hidden) hidden activation;
    written at grid step 0, reused by every later step (grid axis sequential).
    """
    @pl.when(pl.program_id(0) == 0)
    def _():
        h = jnp.dot(x_ref[...], w1_ref[...],
                    preferred_element_type=jnp.float32)          # (N, hidden) f32
        mu = jnp.mean(h, axis=0, keepdims=True)                  # (1, hidden)
        hc = h - mu                                              # two-pass BN
        var = jnp.mean(hc * hc, axis=0, keepdims=True)
        scale = gb_ref[0:1, :] * jax.lax.rsqrt(var + BN_EPS)     # gamma folded
        shift = gb_ref[1:2, :]                                   # beta
        h_ref[...] = jnp.maximum(hc * scale + shift, 0.0).astype(h_ref.dtype)

    y = jnp.dot(h_ref[...], w2_ref[...],
                preferred_element_type=jnp.float32)              # (N, tn) f32
    mu = jnp.mean(y, axis=0, keepdims=True)
    yc = y - mu
    var = jnp.mean(yc * yc, axis=0, keepdims=True)
    o_ref[...] = (yc * jax.lax.rsqrt(var + BN_EPS)).astype(o_ref.dtype)


# --------------------------- VMEM / tiling helpers ----------------------------

def _padded_bytes(shape, dtype):
    """VMEM bytes of one 2-D buffer, padded to its native layout tile."""
    rows, cols = shape
    itemsize = jnp.dtype(dtype).itemsize
    row_tile = 8 * max(1, 4 // itemsize)          # (8,128) f32, (16,128) bf16, ...
    prows = -(-rows // row_tile) * row_tile
    pcols = -(-cols // 128) * 128
    return prows * pcols * itemsize


def _device_vmem_capacity():
    try:
        return int(pltpu.get_tpu_info().vmem_capacity_bytes)
    except Exception:
        return 64 * 1024 * 1024                   # conservative: v7x per-TC VMEM


def _working_set_bytes(N, in_dim, hidden, tn, mxu_dtype):
    """Padded VMEM bytes including the pipeline's default double-buffering."""
    buffers = [
        ((N, in_dim), mxu_dtype, 2),              # x (constant index; 2 bufs)
        ((in_dim, hidden), mxu_dtype, 2),         # w1 (constant index)
        ((2, hidden), jnp.float32, 2),            # packed gamma/beta
        ((hidden, tn), mxu_dtype, 2),             # w2 column tile (pipelined)
        ((N, tn), jnp.float32, 2),                # output tile (pipelined)
        ((N, hidden), mxu_dtype, 1),              # hidden-activation scratch
    ]
    return sum(n * _padded_bytes(s, d) for s, d, n in buffers)


def _pick_out_tile(N, in_dim, hidden, out_dim, mxu_dtype, vmem_cap):
    """Largest lane-aligned out-feature tile that keeps >=2 grid steps and fits."""
    budget = vmem_cap - (4 << 20)
    for t in (512, 256, 128):
        if out_dim % t == 0 and out_dim // t >= 2:
            if _working_set_bytes(N, in_dim, hidden, t, mxu_dtype) <= budget:
                return t
    if _working_set_bytes(N, in_dim, hidden, out_dim, mxu_dtype) <= budget:
        return out_dim                            # small model: a single tile
    # TODO(synk): add a K-tiled (in_dim-blocked) layer-1 / row-blocked path for
    # batch x feature sizes whose resident working set exceeds per-core VMEM
    # (relevant on v7x's 64 MiB at very large N).
    raise ValueError(
        "projection_mlp_forward: resident working set exceeds VMEM capacity "
        f"({vmem_cap} bytes) for N={N}, in_dim={in_dim}, hidden={hidden}, "
        f"out_dim={out_dim}; a K/row-tiled variant is required.")


# --------------------------- wrapper ------------------------------------------

def projection_mlp_forward(x, w1, b1, g1, bt1, w2, b2, *,
                           mxu_dtype=jnp.bfloat16):
    """Forward of projection_MLP (num_layers=2), train-mode BatchNorm.

    x:   (N, in_dim) float32
    w1:  (in_dim, hidden)  layer1 nn.Linear weight, pre-transposed to (in, out)
    b1:  (1, hidden)       accepted for parity; cancelled exactly by BN1
    g1:  (1, hidden)       layer1 BatchNorm1d gamma
    bt1: (1, hidden)       layer1 BatchNorm1d beta
    w2:  (hidden, out_dim) layer3 nn.Linear weight, pre-transposed
    b2:  (1, out_dim)      accepted for parity; cancelled exactly by BN2
    mxu_dtype: dtype feeding the MXU (bf16 default; accumulation is always
        f32).  Pass jnp.float32 for bit-tight parity with an f32 reference.

    NOTE: dropping the Linear biases is exact only for train-mode BatchNorm
    with batch statistics; do not reuse for eval-mode / running-stats BN.
    """
    del b1, b2  # a pre-BN bias is removed exactly by the batch-mean subtraction

    N, in_dim = x.shape
    hidden = w1.shape[1]
    out_dim = w2.shape[1]
    isz = jnp.dtype(mxu_dtype).itemsize

    xc = x.astype(mxu_dtype)
    w1c = w1.astype(mxu_dtype)
    w2c = w2.astype(mxu_dtype)
    gb = jnp.concatenate(
        [g1.reshape(1, hidden), bt1.reshape(1, hidden)], axis=0
    ).astype(jnp.float32)                                        # (2, hidden)

    vmem_cap = _device_vmem_capacity()
    tn = _pick_out_tile(N, in_dim, hidden, out_dim, mxu_dtype, vmem_cap)
    need = _working_set_bytes(N, in_dim, hidden, tn, mxu_dtype)
    vmem_limit = int(min(vmem_cap - (2 << 20), max(32 << 20, need + (8 << 20))))

    return pl.pallas_call(
        _fused_mlp_kernel,
        out_shape=jax.ShapeDtypeStruct((N, out_dim), jnp.float32),
        grid_spec=pltpu.PrefetchScalarGridSpec(
            num_scalar_prefetch=0,
            grid=(out_dim // tn,),
            in_specs=[
                pl.BlockSpec((N, in_dim), lambda j: (0, 0)),      # x (resident)
                pl.BlockSpec((in_dim, hidden), lambda j: (0, 0)), # w1 (resident)
                pl.BlockSpec((2, hidden), lambda j: (0, 0)),      # gamma/beta
                pl.BlockSpec((hidden, tn), lambda j: (0, j)),     # w2 column tile
            ],
            out_specs=pl.BlockSpec((N, tn), lambda j: (0, j)),
            scratch_shapes=[pltpu.VMEM((N, hidden), mxu_dtype)],  # hidden act.
        ),
        compiler_params=pltpu.CompilerParams(
            # The hidden-activation scratch is produced at step 0 and consumed
            # by all later steps -> the grid axis must run sequentially.
            dimension_semantics=("arbitrary",),
            vmem_limit_bytes=vmem_limit),
        cost_estimate=pl.CostEstimate(
            flops=2 * N * in_dim * hidden + 2 * N * hidden * out_dim
                  + 8 * N * (hidden + out_dim),
            transcendentals=hidden + out_dim,
            bytes_accessed=(N * in_dim + in_dim * hidden + hidden * out_dim) * isz
                           + 2 * hidden * 4 + N * out_dim * 4),
    )(xc, w1c, gb, w2c)


# --------------------------- reference / test ---------------------------------

def _torch_linear_init(key, fan_in, fan_out):
    """nn.Linear default init (uniform +-1/sqrt(fan_in)), stored as (in, out)."""
    kw, kb = jax.random.split(key)
    bound = 1.0 / jnp.sqrt(fan_in)
    w = jax.random.uniform(kw, (fan_in, fan_out), jnp.float32, -bound, bound)
    b = jax.random.uniform(kb, (1, fan_out), jnp.float32, -bound, bound)
    return w, b


def _reference(x, w1, b1, g1, bt1, w2, b2):
    """Pure-JAX f32 reference with the exact PyTorch math (biases included)."""
    h = x @ w1 + b1
    mu = h.mean(0, keepdims=True)
    var = ((h - mu) ** 2).mean(0, keepdims=True)
    h = (h - mu) / jnp.sqrt(var + BN_EPS) * g1 + bt1
    h = jnp.maximum(h, 0.0)
    y = h @ w2 + b2
    mu = y.mean(0, keepdims=True)
    var = ((y - mu) ** 2).mean(0, keepdims=True)
    return (y - mu) / jnp.sqrt(var + BN_EPS)


if __name__ == "__main__":
    def run_case(key, N, in_dim, out_dim):
        kx, k1, k2, kg, kb = jax.random.split(key, 5)
        x = jax.random.normal(kx, (N, in_dim), jnp.float32)
        w1, b1 = _torch_linear_init(k1, in_dim, out_dim)        # layer1 Linear
        g1 = jax.random.uniform(kg, (1, out_dim), jnp.float32, 0.5, 1.5)
        bt1 = 0.1 * jax.random.normal(kb, (1, out_dim), jnp.float32)
        w2, b2 = _torch_linear_init(k2, out_dim, out_dim)       # layer3 Linear
        ref = _reference(x, w1, b1, g1, bt1, w2, b2)

        # f32 MXU path: bit-tight vs the f32 reference.
        out_f32 = jax.block_until_ready(
            projection_mlp_forward(x, w1, b1, g1, bt1, w2, b2,
                                   mxu_dtype=jnp.float32))
        assert out_f32.shape == ref.shape
        assert jnp.allclose(out_f32, ref, atol=2e-4, rtol=2e-4), (
            f"f32 path mismatch at N={N}, in={in_dim}, out={out_dim}")

        # default bf16 MXU path: bf16 inputs, f32 accumulation -> looser tol.
        out_bf16 = jax.block_until_ready(
            projection_mlp_forward(x, w1, b1, g1, bt1, w2, b2))
        assert out_bf16.shape == ref.shape
        assert bool(jnp.all(jnp.isfinite(out_bf16)))
        assert jnp.allclose(out_bf16, ref, atol=1e-1, rtol=1e-1), (
            f"bf16 path mismatch at N={N}, in={in_dim}, out={out_dim}")

    key = jax.random.PRNGKey(0)
    k_a, k_b = jax.random.split(key)
    # Small shapes consistent with the module (hidden_dim == out_dim).
    run_case(k_a, N=8, in_dim=32, out_dim=32)
    # Larger case exercising a multi-tile grid (2 out-feature tiles of 256).
    run_case(k_b, N=16, in_dim=64, out_dim=512)

    print("KERNEL_OK")
</pallas_src>

<mosaic_0001>
module attributes {stable_mosaic.version = 11 : i64} {
  func.func @_fused_mlp_kernel(%arg0: i32, %arg1: memref<8x32xf32, #tpu.memory_space<vmem>>, %arg2: memref<32x32xf32, #tpu.memory_space<vmem>>, %arg3: memref<2x32xf32, #tpu.memory_space<vmem>>, %arg4: memref<32x32xf32, #tpu.memory_space<vmem>>, %arg5: memref<8x32xf32, #tpu.memory_space<vmem>>, %arg6: memref<8x32xf32, #tpu.memory_space<vmem>>) attributes {dimension_semantics = [#tpu.dimension_semantics<arbitrary>], iteration_bounds = array<i64: 1>, scalar_prefetch = 0 : i64, scratch_operands = 1 : i64, tpu.core_type = #tpu.core_type<tc>, window_params = [{pipeline_mode = #tpu.pipeline_mode<synchronous>, transform_indices = @transform_0, window_bounds = array<i64: 8, 32>}, {pipeline_mode = #tpu.pipeline_mode<synchronous>, transform_indices = @transform_1, window_bounds = array<i64: 32, 32>}, {pipeline_mode = #tpu.pipeline_mode<synchronous>, transform_indices = @transform_2, window_bounds = array<i64: 2, 32>}, {transform_indices = @transform_3, window_bounds = array<i64: 32, 32>}, {transform_indices = @transform_4, window_bounds = array<i64: 8, 32>}]} {
    %c0_i32 = arith.constant 0 : i32
    %0 = arith.cmpi eq, %arg0, %c0_i32 : i32
    %1 = arith.extui %0 : i1 to i32
    %c0_i32_0 = arith.constant 0 : i32
    %2 = arith.cmpi ne, %1, %c0_i32_0 : i32
    scf.if %2 {
      %c0_11 = arith.constant 0 : index
      %c0_12 = arith.constant 0 : index
      %23 = vector.load %arg1[%c0_11, %c0_12] : memref<8x32xf32, #tpu.memory_space<vmem>>, vector<8x32xf32>
      %c0_13 = arith.constant 0 : index
      %c0_14 = arith.constant 0 : index
      %24 = vector.load %arg2[%c0_13, %c0_14] : memref<32x32xf32, #tpu.memory_space<vmem>>, vector<32x32xf32>
      %cst_15 = arith.constant dense<0.000000e+00> : vector<8x32xf32>
      %25 = tpu.matmul %23, %24, %cst_15 {dimension_numbers = #tpu.dot_dimension_numbers<[1], [0], [0], [1], [0, 0, 1, 1], [], []>} : vector<8x32xf32>, vector<32x32xf32>, vector<8x32xf32> -> vector<8x32xf32>
      %cst_16 = arith.constant dense<0.000000e+00> : vector<32xf32>
      %26 = vector.multi_reduction <add>, %25, %cst_16 [0] : vector<8x32xf32> to vector<32xf32>
      %27 = vector.shape_cast %26 : vector<32xf32> to vector<1x32xf32>
      %cst_17 = arith.constant 8.000000e+00 : f32
      %28 = vector.broadcast %cst_17 : f32 to vector<1x32xf32>
      %29 = arith.divf %27, %28 : vector<1x32xf32>
      %30 = vector.broadcast %29 : vector<1x32xf32> to vector<8x32xf32>
      %31 = arith.subf %25, %30 : vector<8x32xf32>
      %32 = arith.mulf %31, %31 : vector<8x32xf32>
      %cst_18 = arith.constant dense<0.000000e+00> : vector<32xf32>
      %33 = vector.multi_reduction <add>, %32, %cst_18 [0] : vector<8x32xf32> to vector<32xf32>
      %34 = vector.shape_cast %33 : vector<32xf32> to vector<1x32xf32>
      %cst_19 = arith.constant 8.000000e+00 : f32
      %35 = vector.broadcast %cst_19 : f32 to vector<1x32xf32>
      %36 = arith.divf %34, %35 : vector<1x32xf32>
      %c0_20 = arith.constant 0 : index
      %c0_21 = arith.constant 0 : index
      %37 = vector.load %arg3[%c0_20, %c0_21] : memref<2x32xf32, #tpu.memory_space<vmem>>, vector<1x32xf32>
      %cst_22 = arith.constant 9.99999974E-6 : f32
      %38 = vector.broadcast %cst_22 : f32 to vector<1x32xf32>
      %39 = arith.addf %36, %38 : vector<1x32xf32>
      %40 = math.rsqrt %39 : vector<1x32xf32>
      %41 = arith.mulf %37, %40 : vector<1x32xf32>
      %c1 = arith.constant 1 : index
      %c0_23 = arith.constant 0 : index
      %42 = vector.load %arg3[%c1, %c0_23] : memref<2x32xf32, #tpu.memory_space<vmem>>, vector<1x32xf32>
      %43 = vector.broadcast %41 : vector<1x32xf32> to vector<8x32xf32>
      %44 = arith.mulf %31, %43 : vector<8x32xf32>
      %45 = vector.broadcast %42 : vector<1x32xf32> to vector<8x32xf32>
      %46 = arith.addf %44, %45 : vector<8x32xf32>
      %cst_24 = arith.constant 0.000000e+00 : f32
      %47 = vector.broadcast %cst_24 : f32 to vector<8x32xf32>
      %48 = arith.maximumf %46, %47 : vector<8x32xf32>
      %c0_25 = arith.constant 0 : index
      %c0_26 = arith.constant 0 : index
      %49 = vector.load %arg6[%c0_25, %c0_26] : memref<8x32xf32, #tpu.memory_space<vmem>>, vector<8x32xf32>
      tpu.vector_store %arg6[%c0_25, %c0_26], %48 {strides = array<i32>} : memref<8x32xf32, #tpu.memory_space<vmem>>, vector<8x32xf32>,
    } else {
    }
    %c0 = arith.constant 0 : index
    %c0_1 = arith.constant 0 : index
    %3 = vector.load %arg6[%c0, %c0_1] : memref<8x32xf32, #tpu.memory_space<vmem>>, vector<8x32xf32>
    %c0_2 = arith.constant 0 : index
    %c0_3 = arith.constant 0 : index
    %4 = vector.load %arg4[%c0_2, %c0_3] : memref<32x32xf32, #tpu.memory_space<vmem>>, vector<32x32xf32>
    %cst = arith.constant dense<0.000000e+00> : vector<8x32xf32>
    %5 = tpu.matmul %3, %4, %cst {dimension_numbers = #tpu.dot_dimension_numbers<[1], [0], [0], [1], [0, 0, 1, 1], [], []>} : vector<8x32xf32>, vector<32x32xf32>, vector<8x32xf32> -> vector<8x32xf32>
    %cst_4 = arith.constant dense<0.000000e+00> : vector<32xf32>
    %6 = vector.multi_reduction <add>, %5, %cst_4 [0] : vector<8x32xf32> to vector<32xf32>
    %7 = vector.shape_cast %6 : vector<32xf32> to vector<1x32xf32>
    %cst_5 = arith.constant 8.000000e+00 : f32
    %8 = vector.broadcast %cst_5 : f32 to vector<1x32xf32>
    %9 = arith.divf %7, %8 : vector<1x32xf32>
    %10 = vector.broadcast %9 : vector<1x32xf32> to vector<8x32xf32>
    %11 = arith.subf %5, %10 : vector<8x32xf32>
    %12 = arith.mulf %11, %11 : vector<8x32xf32>
    %cst_6 = arith.constant dense<0.000000e+00> : vector<32xf32>
    %13 = vector.multi_reduction <add>, %12, %cst_6 [0] : vector<8x32xf32> to vector<32xf32>
    %14 = vector.shape_cast %13 : vector<32xf32> to vector<1x32xf32>
    %cst_7 = arith.constant 8.000000e+00 : f32
    %15 = vector.broadcast %cst_7 : f32 to vector<1x32xf32>
    %16 = arith.divf %14, %15 : vector<1x32xf32>
    %cst_8 = arith.constant 9.99999974E-6 : f32
    %17 = vector.broadcast %cst_8 : f32 to vector<1x32xf32>
    %18 = arith.addf %16, %17 : vector<1x32xf32>
    %19 = math.rsqrt %18 : vector<1x32xf32>
    %20 = vector.broadcast %19 : vector<1x32xf32> to vector<8x32xf32>
    %21 = arith.mulf %11, %20 : vector<8x32xf32>
    %c0_9 = arith.constant 0 : index
    %c0_10 = arith.constant 0 : index
    %22 = vector.load %arg5[%c0_9, %c0_10] : memref<8x32xf32, #tpu.memory_space<vmem>>, vector<8x32xf32>
    tpu.vector_store %arg5[%c0_9, %c0_10], %21 {strides = array<i32>} : memref<8x32xf32, #tpu.memory_space<vmem>>, vector<8x32xf32>,
    return
  }
  func.func @transform_0(%arg0: i32) -> (i32, i32) {
    %c0_i32 = arith.constant 0 : i32
    %c0_i32_0 = arith.constant 0 : i32
    %c0_i32_1 = arith.constant 0 : i32
    return %c0_i32, %c0_i32_0 : i32, i32
  }
  func.func @transform_1(%arg0: i32) -> (i32, i32) {
    %c0_i32 = arith.constant 0 : i32
    %c0_i32_0 = arith.constant 0 : i32
    %c0_i32_1 = arith.constant 0 : i32
    return %c0_i32, %c0_i32_0 : i32, i32
  }
  func.func @transform_2(%arg0: i32) -> (i32, i32) {
    %c0_i32 = arith.constant 0 : i32
    %c0_i32_0 = arith.constant 0 : i32
    %c0_i32_1 = arith.constant 0 : i32
    return %c0_i32, %c0_i32_0 : i32, i32
  }
  func.func @transform_3(%arg0: i32) -> (i32, i32) {
    %c0_i32 = arith.constant 0 : i32
    %c0_i32_0 = arith.constant 0 : i32
    return %c0_i32, %arg0 : i32, i32
  }
  func.func @transform_4(%arg0: i32) -> (i32, i32) {
    %c0_i32 = arith.constant 0 : i32
    %c0_i32_0 = arith.constant 0 : i32
    return %c0_i32, %arg0 : i32, i32
  }
}

</mosaic_0001>

<bundles_post_ra>
// kernel: tpu_custom_call.1
= control target key start
LH: loop header
LB: loop body
LE: loop exit
PB: predicated region body
PF: predicated region fallthrough
CT: control target
= control target key end

     0   :  { %9 = vsyncpa [#allocation4], 0  ;;  %s550_s0 = inlined_call_operand.hbm [shape: f32[8,32], index: 0, kind: input, shape index: {}]   ;;  %s551_s1 = inlined_call_operand.hbm [shape: f32[32,32], index: 1, kind: input, shape index: {}]   ;;  %s552_s2 = inlined_call_operand.vmem [shape: f32[2,32], index: 2, kind: input, shape index: {}]   ;;  %s553_s3 = inlined_call_operand.hbm [shape: f32[32,32], index: 3, kind: input, shape index: {}]   ;;  %s554_s4 = inlined_call_operand.hbm [shape: f32[8,32], index: 4, kind: output, shape index: {}]  }
   0x1   :  { %10 = vsyncpa [#allocation7], 0 }
   0x2   :  { %11 = vsyncpa [#allocation5], 0  ;;  %s448_s15 = smov [#allocation6]   ;;  %s354_s19 = scalar_lea.hbm %s551_s1, 512 }
   0x3   :  { %s27_s16 = sshll.u32 %s448_s15, 4  ;;  %p355_p0 = scmp.ne.s32.totalorder %s551_s1, %s354_s19  ;;  %s28_s16 = int_to_ptr.vmem [resolvable:$true] %s27_s16 }
   0x4   :  { %p358_p1 = scmp.lt.u32.totalorder %s354_s19, %s551_s1 }
   0x6   :  { %p360_p2 = pnand %p358_p1, %p355_p0 }
   0x8   :  { %363 = shalt.err (!%p360_p2)
}
   0x9   :  { %s364_s24 = scalar_lea.vmem %s28_s16, 512  ;;  %p369_p4 = scmp.lt.s32.totalorder %s28_s16, %s28_s16 }
   0xa   :  { %p365_p3 = scmp.ne.s32.totalorder %s28_s16, %s364_s24  ;;  %p370_p5 = scmp.lt.s32.totalorder %s364_s24, %s364_s24 }
   0xc   :  { %p371_p6 = por %p370_p5, %p369_p4 }
   0xe   :  { %p372_p7 = pnand %p371_p6, %p365_p3 }
  0x10   :  { %375 = shalt.err (!%p372_p7)
}
  0x11   :  { %s449_s25 = smov 128   ;;  %s450_s26 = smov 8  }
  0x12   :  { %33 = dma.hbm_to_vmem [thread:$0]  %s551_s1, 512, %s28_s16, [#allocation7], %s449_s25, %s449_s25, %s450_s26  }
  0x13   :  { %s451_s29 = smov [#allocation3]   ;;  %s452_s5 = smov [#allocation8]  }
  0x14   :  { %s18_s30 = sshll.u32 %s451_s29, 4  ;;  %s41_s6 = sshll.u32 %s452_s5, 4  ;;  %s19_s30 = int_to_ptr.vmem [resolvable:$true] %s18_s30  ;;  %s42_s6 = int_to_ptr.vmem [resolvable:$true] %s41_s6 }
  0x15   :  { %s376_s9 = scalar_lea.hbm %s550_s0, 128 }
  0x16   :  { %p377_p8 = scmp.ne.s32.totalorder %s550_s0, %s376_s9  ;;  %p380_p9 = scmp.lt.u32.totalorder %s376_s9, %s550_s0 }
  0x18   :  { %p382_p10 = pnand %p380_p9, %p377_p8 }
  0x1a   :  { %385 = shalt.err (!%p382_p10)
}
  0x1b   :  { %s386_s1 = scalar_lea.vmem %s19_s30, 128  ;;  %p391_p12 = scmp.lt.s32.totalorder %s19_s30, %s19_s30 }
  0x1c   :  { %p387_p11 = scmp.ne.s32.totalorder %s19_s30, %s386_s1  ;;  %p392_p13 = scmp.lt.s32.totalorder %s386_s1, %s386_s1 }
  0x1e   :  { %p393_p0 = por %p392_p13, %p391_p12 }
  0x20   :  { %p394_p1 = pnand %p393_p0, %p387_p11 }
  0x22   :  { %397 = shalt.err (!%p394_p1)
}
  0x23   :  { %21 = dma.hbm_to_vmem [thread:$0]  %s550_s0, 128, %s19_s30, [#allocation4]  }
  0x24   :  { %s398_s18 = scalar_lea.hbm %s553_s3, 512 }
  0x25   :  { %p399_p2 = scmp.ne.s32.totalorder %s553_s3, %s398_s18  ;;  %p402_p3 = scmp.lt.u32.totalorder %s398_s18, %s553_s3 }
  0x27   :  { %p404_p4 = pnand %p402_p3, %p399_p2 }
  0x29   :  { %407 = shalt.err (!%p404_p4)
}
  0x2a   :  { %s408_s23 = scalar_lea.vmem %s42_s6, 512  ;;  %p413_p6 = scmp.lt.s32.totalorder %s42_s6, %s42_s6 }
  0x2b   :  { %p409_p5 = scmp.ne.s32.totalorder %s42_s6, %s408_s23  ;;  %p414_p7 = scmp.lt.s32.totalorder %s408_s23, %s408_s23 }
  0x2d   :  { %p415_p8 = por %p414_p7, %p413_p6 }
  0x2f   :  { %p416_p9 = pnand %p415_p8, %p409_p5 }
  0x31   :  { %419 = shalt.err (!%p416_p9)
}
  0x32   :  { %47 = dma.hbm_to_vmem [thread:$0]  %s553_s3, 512, %s42_s6, [#allocation7], %s449_s25, %s449_s25, %s450_s26  }
  0x33   :  { %442 = dma.done.wait [#allocation4], 128  }
  0x34   :  { %443 = vsyncadd [#allocation4], 4294967168 }
  0x35   :  { %444 = dma.done.wait [#allocation7], 1024  }
  0x36   :  { %445 = vsyncadd [#allocation7], 4294966272  ;;  %v453_v0 = vmov 0.0|0.0   ;;  %vm454_vm0 = vmmov 0   ;;  %v455_v1 = vmov 0.0   ;;  %v62_v2 = vld [vmem:[#allocation6] sm:$0xff]  ;;  %v164_v36 = vlaneseq }
  0x37   :  { %329 = vmatprep.subr.bf16.mxu0 %v453_v0  ;;  %315 = vmatprep.mubr.msk.f32.mxu0 %vm454_vm0, %v455_v1  ;;  %v63_v3 = vld [vmem:[#allocation6 + $0x8] sm:$0xff]  ;;  %v64_v4 = vld [vmem:[#allocation6 + $0x10] sm:$0xff]  ;;  %v65_v6 = vld [vmem:[#allocation6 + $0x18] sm:$0xff]  ;;  %vm66_vm1 = vcmask 261120  }
  0x38   :  { %335 = vmatprep.subr.bf16.mxu1 %v453_v0  ;;  %326 = vmatprep.mubr.msk.f32.mxu1 %vm454_vm0, %v455_v1  ;;  %v330_v5 = vpack.c.bf16 %v63_v3, %v62_v2  ;;  %v333_v7 = vpack.c.bf16 %v65_v6, %v64_v4  ;;  %v61_v8 = vld [vmem:[#allocation3] sm:$0xff]  ;;  %v177_v9 = vld [vmem:[#allocation8] sm:$0xff]  ;;  %v178_v10 = vld [vmem:[#allocation8 + $0x8] sm:$0xff]  ;;  %v165_v37 = vshrl.u32 %v164_v36, 7 }
  0x39   :  { %v336_v11 = vpack.c.bf16 %v178_v10, %v177_v9  ;;  %v179_v12 = vld [vmem:[#allocation8 + $0x10] sm:$0xff]  ;;  %v180_v13 = vld [vmem:[#allocation8 + $0x18] sm:$0xff] }
  0x3a   :  { %331 = vmatpush3.bf16.msra.mxu0 %v330_v5  ;;  %v339_v14 = vpack.c.bf16 %v180_v13, %v179_v12  ;;  %v159_v38 = vld [vmem:[%s552_s2] sm:$0x1]  ;;  %v166_v39 = vsub.s32 0, %v165_v37  ;;  %v295_v43 = vld [vmem:[%s552_s2 + $0x1] ss:$0 sm:$0xff]  ;;  %s456_s2 = smov [#allocation9]  }
  0x3b   :  { %332 = vmatprep.subr.bf16.mxu0 %v453_v0  ;;  %337 = vmatpush3.bf16.msra.mxu1 %v336_v11  ;;  %s284_s28 = sshll.u32 %s456_s2, 4  ;;  %s285_s28 = int_to_ptr.vmem [resolvable:$true] %s284_s28 }
  0x3c   :  { %338 = vmatprep.subr.bf16.mxu1 %v453_v0  ;;  %s420_s29 = scalar_lea.vmem %s285_s28, 128  ;;  %p425_p11 = scmp.lt.s32.totalorder %s285_s28, %s285_s28 }
  0x3d   :  { %p421_p10 = scmp.ne.s32.totalorder %s285_s28, %s420_s29  ;;  %p426_p12 = scmp.lt.s32.totalorder %s420_s29, %s420_s29 }
  0x3e   :  { %334 = vmatpush3.bf16.msra.mxu0 %v333_v7 }
  0x3f   :  { %340 = vmatpush3.bf16.msra.mxu1 %v339_v14  ;;  %p427_p13 = por %p426_p12, %p425_p11 }
  0x41   :  { %316 = vmatmul.mubr.msk.f32.vlgmr.msra.gmra.mrb[0].mxu0 %vm66_vm1, %v61_v8  ;;  %p428_p0 = pnand %p427_p13, %p421_p10 }
 0x114   :  { %v136_v15 = vpop.f32.mrb[0].mxu0 }
 0x115   :  { %v140_v16 = vsel %vm66_vm1, %v136_v15, 0.0  ;;  %v317_v17 = vpop.f32.mrb[1].mxu0 }
 0x116   :  { %v141_v18 = vrot.slane %v140_v16, 4 }
 0x118   :  { %v142_v19 = vadd.f32 %v141_v18, %v140_v16 }
 0x11a   :  { %v143_v20 = vrot.slane %v142_v19, 2 }
 0x11c   :  { %v144_v21 = vadd.f32 %v143_v20, %v142_v19 }
 0x11e   :  { %v145_v22 = vrot.slane %v144_v21, 1 }
 0x120   :  { %v146_v23 = vadd.f32 %v145_v22, %v144_v21 }
 0x122   :  { %v148_v24 = vmul.f32 0.125, %v146_v23 }
 0x124   :  { %v149_v25 = vsub.f32 %v136_v15, %v148_v24 }
 0x126   :  { %v150_v26 = vmul.f32 %v149_v25, %v149_v25 }
 0x128   :  { %v151_v27 = vsel %vm66_vm1, %v150_v26, 0.0 }
 0x129   :  { %v152_v28 = vrot.slane %v151_v27, 4 }
 0x12b   :  { %v153_v29 = vadd.f32 %v152_v28, %v151_v27 }
 0x12d   :  { %v154_v30 = vrot.slane %v153_v29, 2 }
 0x12f   :  { %v155_v31 = vadd.f32 %v154_v30, %v153_v29 }
 0x131   :  { %v156_v32 = vrot.slane %v155_v31, 1 }
 0x133   :  { %v157_v33 = vadd.f32 %v156_v32, %v155_v31 }
 0x135   :  { %v158_v34 = vmul.f32 0.125, %v157_v33 }
 0x137   :  { %v160_v35 = vadd.f32 1e-05, %v158_v34 }
 0x139   :  { %350 = vrsqrt.f32 %v160_v35 }
 0x143   :  { %v351_v40 = vpop.eup %350 }
 0x144   :  { %v162_v41 = vmul.f32 %v351_v40, %v159_v38 }
 0x146   :  { %v167_v42 = vrot.slane %v162_v41, %v166_v39 }
 0x148   :  { %v168_v44 = vmul.f32 %v167_v42, %v149_v25 }
 0x14a   :  { %v173_v45 = vadd.f32 %v295_v43, %v168_v44 }
 0x14c   :  { %v174_v46 = vmax.f32 %v173_v45, 0.0 }
 0x14e   :  { %175 = vst.msk [vmem:[#allocation2] sm:$0xff] %vm66_vm1, %v174_v46 }
 0x155   :  { %v176_v47 = vld [vmem:[#allocation2] sm:$0xff] }
 0x156   :  { %327 = vmatmul.mubr.msk.f32.vlgmr.msra.gmra.mrb[0].mxu1 %vm66_vm1, %v176_v47 }
 0x229   :  { %v251_v48 = vpop.f32.mrb[0].mxu1 }
 0x22a   :  { %v255_v49 = vsel %vm66_vm1, %v251_v48, 0.0  ;;  %v328_v50 = vpop.f32.mrb[1].mxu1 }
 0x22b   :  { %v256_v51 = vrot.slane %v255_v49, 4 }
 0x22d   :  { %v257_v52 = vadd.f32 %v256_v51, %v255_v49 }
 0x22f   :  { %v258_v53 = vrot.slane %v257_v52, 2 }
 0x231   :  { %v259_v54 = vadd.f32 %v258_v53, %v257_v52 }
 0x233   :  { %v260_v55 = vrot.slane %v259_v54, 1 }
 0x235   :  { %v261_v56 = vadd.f32 %v260_v55, %v259_v54 }
 0x237   :  { %v263_v57 = vmul.f32 0.125, %v261_v56 }
 0x239   :  { %v264_v58 = vsub.f32 %v251_v48, %v263_v57 }
 0x23b   :  { %v265_v59 = vmul.f32 %v264_v58, %v264_v58 }
 0x23d   :  { %v266_v60 = vsel %vm66_vm1, %v265_v59, 0.0 }
 0x23e   :  { %v267_v61 = vrot.slane %v266_v60, 4 }
 0x240   :  { %v268_v62 = vadd.f32 %v267_v61, %v266_v60 }
 0x242   :  { %v269_v63 = vrot.slane %v268_v62, 2 }
 0x244   :  { %v270_v0 = vadd.f32 %v269_v63, %v268_v62 }
 0x246   :  { %v271_v1 = vrot.slane %v270_v0, 1 }
 0x248   :  { %v272_v2 = vadd.f32 %v271_v1, %v270_v0 }
 0x24a   :  { %v273_v3 = vmul.f32 0.125, %v272_v2 }
 0x24c   :  { %v274_v4 = vadd.f32 1e-05, %v273_v3 }
 0x24e   :  { %352 = vrsqrt.f32 %v274_v4 }
 0x258   :  { %v353_v5 = vpop.eup %352 }
 0x259   :  { %v276_v6 = vmul.f32 %v353_v5, %v264_v58 }
 0x25b   :  { %277 = vst.msk [vmem:[#allocation9] sm:$0xff] %vm66_vm1, %v276_v6 }
 0x25c   :  { %431 = shalt.err (!%p428_p0)
}
 0x25d   :  { %s432_s6 = scalar_lea.hbm %s554_s4, 128 }
 0x25e   :  { %p433_p1 = scmp.ne.s32.totalorder %s554_s4, %s432_s6  ;;  %p436_p2 = scmp.lt.u32.totalorder %s432_s6, %s554_s4 }
 0x260   :  { %p438_p3 = pnand %p436_p2, %p433_p1 }
 0x262   :  { %441 = shalt.err (!%p438_p3)
}
 0x263   :  { %287 = dma.vmem_to_hbm [thread:$0]  %s285_s28, 128, %s554_s4, [#allocation5]  }
 0x264   :  { %446 = dma.done.wait [#allocation5], 128  }
 0x265   :  { %447 = vsyncadd [#allocation5], 4294967168 }
 0x266   :  { %291 = vsyncpa [#allocation4], 1 }
 0x267   :  { %292 = vsyncpa [#allocation7], 1 }
 0x268   :  { %293 = vsyncpa [#allocation5], 1 }

</bundles_post_ra>
